<compile_context>
chip_gen: v5e
topology: v5e:2x2
jax: 0.10.0
libtpu: 0.0.40
codegen_flags: <defaults>
</compile_context>

<pallas_src>
import functools

import jax
import jax.numpy as jnp
from jax.experimental import pallas as pl
from jax.experimental.pallas import tpu as pltpu

_MIB = 1 << 20


# ---------------------------------------------------------------------------
# Kernels
# ---------------------------------------------------------------------------
def _gram_kernel(feat_ref, g_ref, *, inv_norm, k_total, tk, mask_tail):
    # feat_ref: (M, TK) VMEM tile of the feature stream.
    # g_ref:    (M, M) f32 output block, resident across the K grid axis.
    k = pl.program_id(0)

    @pl.when(k == 0)
    def _():
        g_ref[...] = jnp.zeros_like(g_ref)

    f = feat_ref[...]
    if mask_tail:
        # grid = cdiv(K, TK): zero the out-of-range columns of the tail tile
        # before the dot (cheap VPU work, hidden under the DMA/MXU).
        col = jax.lax.broadcasted_iota(jnp.int32, f.shape, 1)
        f = jnp.where(k * tk + col < k_total, f, jnp.zeros_like(f))

    # f @ f.T without materializing the transpose: contract last dims.
    g_ref[...] += jax.lax.dot_general(
        f, f,
        dimension_numbers=(((1,), (1,)), ((), ())),
        preferred_element_type=jnp.float32,
    )

    @pl.when(k == pl.num_programs(0) - 1)
    def _():
        g_ref[...] = g_ref[...] * inv_norm


def _style_loss_kernel(feat_ref, target_hbm_ref, loss_ref,
                       acc_ref, tgt_ref, copy_sem, *,
                       inv_norm, inv_elems, k_total, tk, mask_tail):
    # feat_ref:       (M, TK) VMEM tile
    # target_hbm_ref: (M, M) f32 raw HBM ref (memory_space=pl.ANY)
    # loss_ref:       (1, 1) SMEM scalar output
    # acc_ref:        (M, M) f32 VMEM scratch accumulator
    # tgt_ref:        (M, M) f32 VMEM scratch (single-buffered target copy)
    # copy_sem:       DMA semaphore for the one-shot target copy
    k = pl.program_id(0)

    @pl.when(k == 0)
    def _():
        acc_ref[...] = jnp.zeros_like(acc_ref)
        # Single-buffered target: one manual DMA, started early so it fully
        # overlaps the K streaming; waited on only in the finalize step.
        pltpu.make_async_copy(target_hbm_ref, tgt_ref, copy_sem).start()

    f = feat_ref[...]
    if mask_tail:
        col = jax.lax.broadcasted_iota(jnp.int32, f.shape, 1)
        f = jnp.where(k * tk + col < k_total, f, jnp.zeros_like(f))

    acc_ref[...] += jax.lax.dot_general(
        f, f,
        dimension_numbers=(((1,), (1,)), ((), ())),
        preferred_element_type=jnp.float32,
    )

    @pl.when(k == pl.num_programs(0) - 1)
    def _():
        pltpu.make_async_copy(target_hbm_ref, tgt_ref, copy_sem).wait()
        g = acc_ref[...] * inv_norm
        diff = g - tgt_ref[...]
        # mse_loss(G, target) with default 'mean' reduction; fused — the Gram
        # of the input never goes to HBM.
        loss_ref[0, 0] = jnp.sum(diff * diff) * inv_elems


# ---------------------------------------------------------------------------
# Sizing helpers (generation-aware)
# ---------------------------------------------------------------------------
def _tpu_vmem_capacity_bytes():
    try:
        return int(pltpu.get_tpu_info().vmem_capacity_bytes)
    except Exception:
        return 64 * _MIB  # conservative (v7x-sized) fallback


def _choose_tk(m, k, itemsize, per_buffer_bytes):
    """Pick the K-tile.  Prefer (a) a single full-K tile, then (b) the largest
    128-multiple <= target that divides K exactly (no tail), else (c) the
    128-multiple target with an in-kernel tail mask.  Never a wrapper pad."""
    tk_target = per_buffer_bytes // max(1, m * itemsize)
    tk_target = max(128, (tk_target // 128) * 128)
    if tk_target >= k:
        return k, False  # single tile == full (possibly non-128-multiple) dim
    if k % 128 == 0:
        q = k // 128
        best = None
        for d in range(tk_target // 128, 0, -1):
            if q % d == 0:
                best = 128 * d
                break
        if best is not None and 2 * best >= tk_target:
            return best, False
    return tk_target, True


def _plan(m, k, itemsize, n_resident_mm, per_buffer_override=None):
    """Derive (tk, n_k, mask_tail, vmem_limit_bytes) for this chip generation."""
    cap = _tpu_vmem_capacity_bytes()
    # Never request more than ~80% of physical VMEM: ~51 MiB on v7x (64 MiB
    # physical, compiler needs internal scratch), ~102 MiB on v5e/v6e.
    request_cap = int(cap * 0.8)
    fixed = n_resident_mm * m * m * 4      # resident f32 (M, M) buffers
    headroom = 4 * _MIB
    avail_for_stream = max(request_cap - fixed - headroom, 2 * _MIB)
    # Per-generation ceiling on one feature pipeline buffer: bigger tiles on
    # 128-MiB-VMEM chips to amortize the ~0.35 us per-grid-step overhead;
    # tighter on v7x's 64 MiB.
    per_buffer_cap = 14 * _MIB if cap >= 96 * _MIB else 8 * _MIB
    per_buffer = min(avail_for_stream // 2, per_buffer_cap)
    if per_buffer_override is not None:
        per_buffer = per_buffer_override
    tk, mask_tail = _choose_tk(m, k, itemsize, per_buffer)
    n_k = pl.cdiv(k, tk)
    needed = 2 * m * tk * itemsize + fixed + headroom
    vmem_bytes = int(min(request_cap, max(needed, 16 * _MIB)))
    return tk, n_k, mask_tail, vmem_bytes


def _prep_feats(x, stream_dtype):
    """NCHW -> (M, K) features (free reshape, no padding, no HBM copy)."""
    n, c, h, w = x.shape
    m, k = n * c, h * w
    feats = x.reshape(m, k)
    if stream_dtype is not None and feats.dtype != jnp.dtype(stream_dtype):
        # Opt-in only: casting f32 data here adds an HBM pass; the real win is
        # when the activations are already bf16.
        feats = feats.astype(stream_dtype)
    return feats, m, k


# ---------------------------------------------------------------------------
# Wrappers
# ---------------------------------------------------------------------------
def gram_matrix(x, *, stream_dtype=None, per_buffer_bytes=None):
    """x: (N, C, H, W) -> (N*C, N*C) float32 Gram matrix (PyTorch semantics)."""
    n, c, h, w = x.shape
    feats, m, k = _prep_feats(x, stream_dtype)
    itemsize = jnp.dtype(feats.dtype).itemsize
    # Resident (M, M) f32 output block; assume a double buffer for it.
    tk, n_k, mask_tail, vmem_bytes = _plan(
        m, k, itemsize, n_resident_mm=2, per_buffer_override=per_buffer_bytes)
    inv_norm = 1.0 / float(n * c * h * w)
    kernel = functools.partial(
        _gram_kernel, inv_norm=inv_norm, k_total=k, tk=tk, mask_tail=mask_tail)
    return pl.pallas_call(
        kernel,
        out_shape=jax.ShapeDtypeStruct((m, m), jnp.float32),
        grid_spec=pltpu.PrefetchScalarGridSpec(
            num_scalar_prefetch=0,
            grid=(n_k,),
            in_specs=[pl.BlockSpec((m, tk), lambda kk: (0, kk))],
            out_specs=pl.BlockSpec((m, m), lambda kk: (0, 0)),
        ),
        compiler_params=pltpu.CompilerParams(
            dimension_semantics=("arbitrary",),
            vmem_limit_bytes=vmem_bytes,
        ),
        cost_estimate=pl.CostEstimate(
            flops=2 * m * m * k,
            transcendentals=0,
            bytes_accessed=m * k * itemsize + m * m * 4,
        ),
    )(feats)


def style_loss(x, target_gram, *, stream_dtype=None, per_buffer_bytes=None):
    """Scalar MSE(gram_matrix(x), target_gram), fully fused in one kernel."""
    n, c, h, w = x.shape
    feats, m, k = _prep_feats(x, stream_dtype)
    itemsize = jnp.dtype(feats.dtype).itemsize
    target_gram = target_gram.astype(jnp.float32)
    # Resident f32 (M, M) buffers: accumulator scratch + single-buffered target.
    tk, n_k, mask_tail, vmem_bytes = _plan(
        m, k, itemsize, n_resident_mm=2, per_buffer_override=per_buffer_bytes)
    inv_norm = 1.0 / float(n * c * h * w)
    inv_elems = 1.0 / float(m * m)
    kernel = functools.partial(
        _style_loss_kernel, inv_norm=inv_norm, inv_elems=inv_elems,
        k_total=k, tk=tk, mask_tail=mask_tail)
    loss = pl.pallas_call(
        kernel,
        out_shape=jax.ShapeDtypeStruct((1, 1), jnp.float32),
        grid_spec=pltpu.PrefetchScalarGridSpec(
            num_scalar_prefetch=0,
            grid=(n_k,),
            in_specs=[
                pl.BlockSpec((m, tk), lambda kk: (0, kk)),
                # Target stays in HBM; copied once by a manual DMA (no
                # per-step double-buffering of an invariant block).
                pl.BlockSpec(memory_space=pl.ANY),
            ],
            out_specs=pl.BlockSpec(memory_space=pltpu.MemorySpace.SMEM),
            scratch_shapes=[
                pltpu.VMEM((m, m), jnp.float32),   # Gram accumulator
                pltpu.VMEM((m, m), jnp.float32),   # single-buffered target
                pltpu.SemaphoreType.DMA,           # one-shot copy semaphore
            ],
        ),
        compiler_params=pltpu.CompilerParams(
            dimension_semantics=("arbitrary",),
            vmem_limit_bytes=vmem_bytes,
        ),
        cost_estimate=pl.CostEstimate(
            flops=2 * m * m * k,
            transcendentals=0,
            bytes_accessed=m * k * itemsize + m * m * 4 + 4,
        ),
    )(feats, target_gram)
    return loss[0, 0]


class StyleLoss:
    """Mirrors the PyTorch module: holds a target Gram; __call__ returns the
    input unchanged and stores the MSE style loss in self.loss."""

    def __init__(self, target_feature, *, stream_dtype=None):
        self.stream_dtype = stream_dtype
        # "detached" by construction (no autograd here).
        self.target = gram_matrix(target_feature, stream_dtype=stream_dtype)
        self.loss = None

    def __call__(self, x):
        self.loss = style_loss(x, self.target, stream_dtype=self.stream_dtype)
        return x  # identity passthrough, like the PyTorch module


# ---------------------------------------------------------------------------
# Main
# ---------------------------------------------------------------------------
if __name__ == "__main__":
    key = jax.random.PRNGKey(0)
    k1, k2, k3, k4 = jax.random.split(key, 4)

    def ref_gram(t):
        n, c, h, w = t.shape
        f = t.reshape(n * c, h * w).astype(jnp.float32)
        return (f @ f.T) / (n * c * h * w)

    # --- 1) f32 path, single-tile K (batch=2, channels=4, spatial=16) -------
    target_feature = jax.random.normal(k1, (2, 4, 16, 16), dtype=jnp.float32)
    x = jax.random.normal(k2, (2, 4, 16, 16), dtype=jnp.float32)

    module = StyleLoss(target_feature)
    out = module(x)
    jax.block_until_ready(out)
    jax.block_until_ready(module.loss)

    ref_loss = jnp.mean((ref_gram(x) - ref_gram(target_feature)) ** 2)
    assert jnp.allclose(module.loss, ref_loss, rtol=1e-5, atol=1e-6), (
        module.loss, ref_loss)
    assert jnp.allclose(gram_matrix(x), ref_gram(x), rtol=1e-5, atol=1e-6)
    assert jnp.array_equal(out, x)

    # --- 2) multi-tile K with in-kernel tail masking (K=400, TK=128) --------
    x2 = jax.random.normal(k3, (2, 4, 20, 20), dtype=jnp.float32)
    t2 = jax.random.normal(k4, (2, 4, 20, 20), dtype=jnp.float32)
    small_buf = 8 * 4 * 128  # forces TK=128 -> grid=cdiv(400,128), masked tail
    g2 = gram_matrix(x2, per_buffer_bytes=small_buf)
    jax.block_until_ready(g2)
    assert jnp.allclose(g2, ref_gram(x2), rtol=1e-5, atol=1e-6)
    l2 = style_loss(x2, gram_matrix(t2), per_buffer_bytes=small_buf)
    jax.block_until_ready(l2)
    ref_l2 = jnp.mean((ref_gram(x2) - ref_gram(t2)) ** 2)
    assert jnp.allclose(l2, ref_l2, rtol=1e-5, atol=1e-6), (l2, ref_l2)

    # --- 3) multi-tile K with an exact 128-multiple divisor (K=512, TK=256) -
    x3 = jax.random.normal(k3, (2, 4, 16, 32), dtype=jnp.float32)
    g3 = gram_matrix(x3, per_buffer_bytes=8 * 4 * 256)
    jax.block_until_ready(g3)
    assert jnp.allclose(g3, ref_gram(x3), rtol=1e-5, atol=1e-6)

    # --- 4) bf16 streaming path (halved HBM bytes, MXU-native, f32 accum) ---
    xb = x.astype(jnp.bfloat16)
    tb = target_feature.astype(jnp.bfloat16)
    module_b = StyleLoss(tb)
    out_b = module_b(xb)
    jax.block_until_ready(module_b.loss)
    ref_loss_b = jnp.mean((ref_gram(xb) - ref_gram(tb)) ** 2)
    assert jnp.allclose(module_b.loss, ref_loss_b, rtol=5e-3, atol=1e-5), (
        module_b.loss, ref_loss_b)
    assert jnp.array_equal(out_b, xb)

    print("KERNEL_OK")
</pallas_src>

<mosaic_0001>
module attributes {stable_mosaic.version = 11 : i64} {
  func.func @_gram_kernel(%arg0: i32, %arg1: memref<8x256xf32, #tpu.memory_space<vmem>>, %arg2: memref<8x8xf32, #tpu.memory_space<vmem>>) attributes {dimension_semantics = [#tpu.dimension_semantics<arbitrary>], iteration_bounds = array<i64: 1>, scalar_prefetch = 0 : i64, scratch_operands = 0 : i64, tpu.core_type = #tpu.core_type<tc>, window_params = [{transform_indices = @transform_0, window_bounds = array<i64: 8, 256>}, {pipeline_mode = #tpu.pipeline_mode<synchronous>, transform_indices = @transform_1, window_bounds = array<i64: 8, 8>}]} {
    %c0_i32 = arith.constant 0 : i32
    %0 = arith.cmpi eq, %arg0, %c0_i32 : i32
    %1 = arith.extui %0 : i1 to i32
    %c0_i32_0 = arith.constant 0 : i32
    %2 = arith.cmpi ne, %1, %c0_i32_0 : i32
    scf.if %2 {
      %cst_8 = arith.constant 0.000000e+00 : f32
      %11 = vector.broadcast %cst_8 : f32 to vector<8x8xf32>
      %c0_9 = arith.constant 0 : index
      %c0_10 = arith.constant 0 : index
      %12 = vector.load %arg2[%c0_9, %c0_10] : memref<8x8xf32, #tpu.memory_space<vmem>>, vector<8x8xf32>
      tpu.vector_store %arg2[%c0_9, %c0_10], %11 {strides = array<i32>} : memref<8x8xf32, #tpu.memory_space<vmem>>, vector<8x8xf32>,
    } else {
    }
    %c0 = arith.constant 0 : index
    %c0_1 = arith.constant 0 : index
    %3 = vector.load %arg1[%c0, %c0_1] : memref<8x256xf32, #tpu.memory_space<vmem>>, vector<8x256xf32>
    %c0_2 = arith.constant 0 : index
    %c0_3 = arith.constant 0 : index
    %4 = vector.load %arg2[%c0_2, %c0_3] : memref<8x8xf32, #tpu.memory_space<vmem>>, vector<8x8xf32>
    %cst = arith.constant dense<0.000000e+00> : vector<8x8xf32>
    %5 = tpu.matmul %3, %3, %cst {dimension_numbers = #tpu.dot_dimension_numbers<[1], [1], [0], [0], [0, 0, 1, 0], [], []>} : vector<8x256xf32>, vector<8x256xf32>, vector<8x8xf32> -> vector<8x8xf32>
    %6 = arith.addf %4, %5 : vector<8x8xf32>
    %c0_4 = arith.constant 0 : index
    %c0_5 = arith.constant 0 : index
    %7 = vector.load %arg2[%c0_4, %c0_5] : memref<8x8xf32, #tpu.memory_space<vmem>>, vector<8x8xf32>
    tpu.vector_store %arg2[%c0_4, %c0_5], %6 {strides = array<i32>} : memref<8x8xf32, #tpu.memory_space<vmem>>, vector<8x8xf32>,
    %c0_i32_6 = arith.constant 0 : i32
    %8 = arith.cmpi eq, %arg0, %c0_i32_6 : i32
    %9 = arith.extui %8 : i1 to i32
    %c0_i32_7 = arith.constant 0 : i32
    %10 = arith.cmpi ne, %9, %c0_i32_7 : i32
    scf.if %10 {
      %c0_8 = arith.constant 0 : index
      %c0_9 = arith.constant 0 : index
      %11 = vector.load %arg2[%c0_8, %c0_9] : memref<8x8xf32, #tpu.memory_space<vmem>>, vector<8x8xf32>
      %cst_10 = arith.constant 4.8828125E-4 : f32
      %12 = vector.broadcast %cst_10 : f32 to vector<8x8xf32>
      %13 = arith.mulf %11, %12 : vector<8x8xf32>
      %c0_11 = arith.constant 0 : index
      %c0_12 = arith.constant 0 : index
      %14 = vector.load %arg2[%c0_11, %c0_12] : memref<8x8xf32, #tpu.memory_space<vmem>>, vector<8x8xf32>
      tpu.vector_store %arg2[%c0_11, %c0_12], %13 {strides = array<i32>} : memref<8x8xf32, #tpu.memory_space<vmem>>, vector<8x8xf32>,
    } else {
    }
    return
  }
  func.func @transform_0(%arg0: i32) -> (i32, i32) {
    %c0_i32 = arith.constant 0 : i32
    %c0_i32_0 = arith.constant 0 : i32
    return %c0_i32, %arg0 : i32, i32
  }
  func.func @transform_1(%arg0: i32) -> (i32, i32) {
    %c0_i32 = arith.constant 0 : i32
    %c0_i32_0 = arith.constant 0 : i32
    %c0_i32_1 = arith.constant 0 : i32
    return %c0_i32, %c0_i32_0 : i32, i32
  }
}

</mosaic_0001>

<bundles_post_ra>
// kernel: tpu_custom_call.1
= control target key start
LH: loop header
LB: loop body
LE: loop exit
PB: predicated region body
PF: predicated region fallthrough
CT: control target
= control target key end

     0   :  { %6 = vsyncpa [#allocation3], 0  ;;  %s175_s0 = inlined_call_operand.hbm [shape: f32[8,256], index: 0, kind: input, shape index: {}]   ;;  %s176_s1 = inlined_call_operand.hbm [shape: f32[8,8], index: 1, kind: output, shape index: {}]  }
   0x1   :  { %7 = vsyncpa [#allocation4], 0  ;;  %s13_s8 = sshll.u32 %s175_s0, 4  ;;  %s153_s9 = smov [#allocation2]   ;;  %s14_s8 = int_to_ptr.hbm [resolvable:$true] %s13_s8 }
   0x2   :  { %s15_s10 = sshll.u32 %s153_s9, 4  ;;  %s16_s10 = int_to_ptr.vmem [resolvable:$true] %s15_s10 }
   0x3   :  { %18 = dma.hbm_to_vmem [thread:$0]  %s14_s8, 256, %s16_s10, [#allocation3]  }
   0x4   :  { %149 = dma.done.wait [#allocation3], 256  }
   0x5   :  { %150 = vsyncadd [#allocation3], 4294967040  ;;  %v29_v0 = vld [vmem:[#allocation2] sm:$0xff]  ;;  %v30_v1 = vld [vmem:[#allocation2 + $0x8] sm:$0xff]  ;;  %vm27_vm0 = vcmask 64512   ;;  %v154_v2 = vmov 0.0  }
   0x6   :  { %47 = vmatpush.xpose.msra.mxu0 %v29_v0  ;;  %67 = vmatpush.xpose.msra.mxu1 %v30_v1  ;;  %28 = vst.msk [vmem:[#allocation5] sm:$0xff] %vm27_vm0, %v154_v2  ;;  %s155_s0 = smov [#allocation5]   ;;  %s88_s14 = sshll.u32 %s176_s1, 4  ;;  %s89_s14 = int_to_ptr.hbm [resolvable:$true] %s88_s14 }
   0x7   :  { %s86_s11 = sshll.u32 %s155_s0, 4  ;;  %s87_s11 = int_to_ptr.vmem [resolvable:$true] %s86_s11 }
   0x9   :  { %48 = vmatmul.f32.vlgmr.msra.gmra.mxu0 %v29_v0  ;;  %68 = vmatmul.f32.vlgmr.msra.gmra.mxu1 %v30_v1 }
   0xd   :  { %v31_v4 = vld [vmem:[#allocation5] sm:$0xff] }
  0x86   :  { %v49_v3 = vpop.f32.mrf.mxu0  ;;  %v69_v5 = vpop.f32.mrf.mxu1 }
  0x87   :  { %v70_v6 = vadd.f32 %v69_v5, %v49_v3 }
  0x89   :  { %v72_v7 = vadd.f32 %v70_v6, %v31_v4 }
  0x8b   :  { %74 = vst.msk [vmem:[#allocation5] sm:$0xff] %vm27_vm0, %v72_v7 }
  0x92   :  { %v78_v8 = vld [vmem:[#allocation5] sm:$0xff] }
  0x93   :  { %v79_v9 = vmul.f32 0.00048828125, %v78_v8 }
  0x95   :  { %80 = vst.msk [vmem:[#allocation5] sm:$0xff] %vm27_vm0, %v79_v9 }
  0x96   :  { %91 = dma.vmem_to_hbm [thread:$0]  %s87_s11, 128, %s89_s14, [#allocation4]  }
  0x97   :  { %151 = dma.done.wait [#allocation4], 128  }
  0x98   :  { %152 = vsyncadd [#allocation4], 4294967168 }
  0x99   :  { %96 = vsyncpa [#allocation3], 1 }
  0x9a   :  { %97 = vsyncpa [#allocation4], 1 }

</bundles_post_ra>
